<compile_context>
chip_gen: v5e
topology: v5e:2x2
jax: 0.10.0
libtpu: 0.0.40
codegen_flags: <defaults>
</compile_context>

<pallas_src>
import functools

import jax
import jax.numpy as jnp
from jax.experimental import pallas as pl
from jax.experimental.pallas import tpu as pltpu


def _td3_critic_kernel(sT_ref, aT_ref,
                       w1sT_ref, w1aT_ref, b1T_ref,
                       w2T_ref, b2T_ref,
                       w3T_ref, b3T_ref,
                       qT_ref):
    """One batch tile (TM lanes) of the fused two-head critic MLP.

    Feature-major: every activation is (features, TM) so the batch sits on
    the 128-lane axis.  MXU accumulation is f32; bias-add/ReLU run in f32 on
    the VPU; operands of later matmuls are cast back to the weight dtype.
    """
    cd = w1sT_ref.dtype

    # Layer 1: [state, action] concat folded into two small-K matmuls.
    h = jnp.dot(w1sT_ref[...], sT_ref[...], preferred_element_type=jnp.float32)
    h = h + jnp.dot(w1aT_ref[...], aT_ref[...],
                    preferred_element_type=jnp.float32)
    h = jnp.maximum(h + b1T_ref[...], 0.0)                       # (2H, TM) f32

    # Layer 2: block-diagonal weight keeps the two heads independent.
    h = jnp.dot(w2T_ref[...], h.astype(cd), preferred_element_type=jnp.float32)
    h = jnp.maximum(h + b2T_ref[...], 0.0)                       # (2H, TM) f32

    # Output layer: row 0 is q1, row 1 is q2 -> lane-dense (2, TM) store.
    q = jnp.dot(w3T_ref[...], h.astype(cd), preferred_element_type=jnp.float32)
    qT_ref[...] = (q + b3T_ref[...]).astype(qT_ref.dtype)


def _block_diag(a, b):
    za = jnp.zeros((a.shape[0], b.shape[1]), a.dtype)
    zb = jnp.zeros((b.shape[0], a.shape[1]), b.dtype)
    return jnp.concatenate(
        [jnp.concatenate([a, za], axis=1), jnp.concatenate([zb, b], axis=1)],
        axis=0)


def fuse_head_params(q1_params, q2_params, state_dim,
                     compute_dtype=jnp.bfloat16):
    """Fuse the per-head parameters into feature-major (transposed) tensors.

    Weights land in `compute_dtype` (bf16 recommended); biases stay f32
    because the bias-add / ReLU path runs in f32 on the VPU.
    Expects weights as [in, out] and biases as [1, out].
    """
    w1a, b1a, w2a, b2a, w3a, b3a = q1_params
    w1b, b1b, w2b, b2b, w3b, b3b = q2_params

    # Layer 1: heads fused along the output axis, then transposed and split
    # along the input-feature axis so the concat folds into two matmuls.
    w1T = jnp.concatenate([w1a, w1b], axis=1).T                   # [2H, S+A]
    w1sT = w1T[:, :state_dim].astype(compute_dtype)               # [2H, S]
    w1aT = w1T[:, state_dim:].astype(compute_dtype)               # [2H, A]
    b1T = jnp.concatenate([b1a, b1b], axis=1).T.astype(jnp.float32)   # [2H, 1]

    # TODO(synk): for production hidden sizes (H >= 128) replace the
    # block-diagonal W2/W3 with two per-head matmuls; the zero half is only
    # free while 2H fits inside a single MXU tile.
    w2T = _block_diag(w2a.T, w2b.T).astype(compute_dtype)         # [2H, 2H]
    b2T = jnp.concatenate([b2a, b2b], axis=1).T.astype(jnp.float32)   # [2H, 1]
    w3T = _block_diag(w3a.T, w3b.T).astype(compute_dtype)         # [2, 2H]
    b3T = jnp.concatenate([b3a, b3b], axis=1).T.astype(jnp.float32)   # [2, 1]

    return (w1sT, w1aT, b1T, w2T, b2T, w3T, b3T)


def _choose_batch_tile(batch, tm):
    """Pick the batch (lane) tile.

    Small batches run as one full-array block (block dims equal to the full
    array satisfy the (8,128) rule even off-multiple).  Larger batches use a
    multiple-of-128 tile capped so the grid has >= 2 steps, letting
    dimension_semantics=("parallel",) shard across both v7x TensorCores.
    """
    if batch <= 256:
        return batch
    tm = max(128, (int(tm) // 128) * 128)
    half = pl.cdiv(pl.cdiv(batch, 2), 128) * 128
    return min(tm, half)


def td3_critic_forward(state, action, params, *, tm=4096,
                       compute_dtype=jnp.bfloat16,
                       vmem_limit_bytes=32 * 1024 * 1024):
    """Fused two-head TD3 critic forward.  Returns (q1, q2), each [batch, 1].

    params = (q1_params, q2_params), each (w1, b1, w2, b2, w3, b3) with
    weights stored as [in_features, out_features] and biases as [1, out].
    """
    batch, state_dim = state.shape
    action_dim = action.shape[1]
    hidden = params[0][2].shape[0]                 # H (per head)

    fused = fuse_head_params(params[0], params[1], state_dim, compute_dtype)
    w1sT, w1aT, b1T, w2T, b2T, w3T, b3T = fused

    # Feature-major streams: batch on the 128-lane axis.  (Callers that can
    # keep state/action in this layout avoid the transpose copy entirely.)
    sT = state.astype(compute_dtype).T             # (S, B)
    aT = action.astype(compute_dtype).T            # (A, B)

    tm_eff = _choose_batch_tile(batch, tm)
    grid = (pl.cdiv(batch, tm_eff),)

    def streamed(feat):
        return pl.BlockSpec((feat, tm_eff), lambda i: (0, i))

    def resident(arr):
        return pl.BlockSpec(arr.shape, lambda i: (0, 0))

    in_specs = [
        streamed(state_dim), streamed(action_dim),
        resident(w1sT), resident(w1aT), resident(b1T),
        resident(w2T), resident(b2T),
        resident(w3T), resident(b3T),
    ]
    out_specs = pl.BlockSpec((2, tm_eff), lambda i: (0, i))

    # Advisory cost estimate (real FLOPs of both heads; bytes ~= streamed
    # feature-major activations + (2, B) output + resident params).
    macs_per_row = 2 * ((state_dim + action_dim) * hidden
                        + hidden * hidden + hidden)
    act_bytes = batch * (state_dim + action_dim) * sT.dtype.itemsize
    param_bytes = sum(int(x.size) * x.dtype.itemsize for x in fused)
    cost = pl.CostEstimate(
        flops=2 * batch * macs_per_row,
        transcendentals=0,
        bytes_accessed=act_bytes + batch * 2 * 4 + param_bytes,
    )

    qT = pl.pallas_call(
        _td3_critic_kernel,
        out_shape=jax.ShapeDtypeStruct((2, batch), jnp.float32),
        grid=grid,
        in_specs=in_specs,
        out_specs=out_specs,
        compiler_params=pltpu.CompilerParams(
            dimension_semantics=("parallel",),     # v7x: shard batch over TCs
            vmem_limit_bytes=vmem_limit_bytes,
        ),
        cost_estimate=cost,
    )(sT, aT, w1sT, w1aT, b1T, w2T, b2T, w3T, b3T)

    # Match the PyTorch module's (q1, q2) return.  Downstream consumers that
    # only need min(q1, q2) should take it from qT directly to avoid the two
    # narrow (B, 1) copies.
    return qT[0, :, None], qT[1, :, None]


def init_mlp_params(key, sizes):
    """PyTorch-style Linear init (U[-1/sqrt(fan_in), 1/sqrt(fan_in)]),
    deterministic from a JAX PRNG key. Weights stored as [in, out]."""
    params = []
    for i in range(len(sizes) - 1):
        fan_in, fan_out = sizes[i], sizes[i + 1]
        key, kw, kb = jax.random.split(key, 3)
        bound = 1.0 / jnp.sqrt(fan_in)
        w = jax.random.uniform(kw, (fan_in, fan_out), jnp.float32, -bound, bound)
        b = jax.random.uniform(kb, (1, fan_out), jnp.float32, -bound, bound)
        params += [w, b]
    return tuple(params)


def reference_forward(state, action, params):
    """Plain-JAX reference matching the torch module, for sanity checking."""
    sa = jnp.concatenate([state, action], axis=1).astype(jnp.float32)

    def mlp(p):
        w1, b1, w2, b2, w3, b3 = p
        h = jnp.maximum(sa @ w1 + b1, 0.0)
        h = jnp.maximum(h @ w2 + b2, 0.0)
        return h @ w3 + b3

    return mlp(params[0]), mlp(params[1])


if __name__ == "__main__":
    state_dim, action_dim, hidden_sizes = 8, 4, (32, 32)
    sizes = (state_dim + action_dim,) + tuple(hidden_sizes) + (1,)

    key = jax.random.PRNGKey(0)
    k_q1, k_q2, k_data = jax.random.split(key, 3)
    params = (init_mlp_params(k_q1, sizes), init_mlp_params(k_q2, sizes))

    fwd_f32 = jax.jit(functools.partial(td3_critic_forward,
                                        compute_dtype=jnp.float32))

    # Case 1: tiny batch (single grid step, blocks == full arrays), f32.
    ks, ka = jax.random.split(k_data)
    state = jax.random.normal(ks, (2, state_dim), jnp.float32)
    action = jax.random.normal(ka, (2, action_dim), jnp.float32)
    q1, q2 = fwd_f32(state, action, params)
    jax.block_until_ready((q1, q2))
    r1, r2 = reference_forward(state, action, params)
    assert q1.shape == (2, 1) and q2.shape == (2, 1)
    assert jnp.allclose(q1, r1, atol=1e-5) and jnp.allclose(q2, r2, atol=1e-5)

    # Case 2: multi-step grid with a ragged last tile (batch=300 -> tile 256,
    # two grid steps so v7x megacore uses both TensorCores), f32.
    ks2, ka2 = jax.random.split(jax.random.fold_in(k_data, 1))
    state2 = jax.random.normal(ks2, (300, state_dim), jnp.float32)
    action2 = jax.random.normal(ka2, (300, action_dim), jnp.float32)
    q1, q2 = fwd_f32(state2, action2, params)
    jax.block_until_ready((q1, q2))
    r1, r2 = reference_forward(state2, action2, params)
    assert q1.shape == (300, 1) and q2.shape == (300, 1)
    assert jnp.allclose(q1, r1, atol=1e-5) and jnp.allclose(q2, r2, atol=1e-5)

    # Case 3: default bf16 streaming path (MXU-native, f32 accumulation).
    q1b, q2b = jax.jit(td3_critic_forward)(state2, action2, params)
    jax.block_until_ready((q1b, q2b))
    assert jnp.allclose(q1b, r1, atol=1e-1) and jnp.allclose(q2b, r2, atol=1e-1)

    print("KERNEL_OK")
</pallas_src>

<mosaic_0001>
module attributes {stable_mosaic.version = 11 : i64} {
  func.func @_td3_critic_kernel(%arg0: i32, %arg1: memref<8x2xf32, #tpu.memory_space<vmem>>, %arg2: memref<4x2xf32, #tpu.memory_space<vmem>>, %arg3: memref<64x8xf32, #tpu.memory_space<vmem>>, %arg4: memref<64x4xf32, #tpu.memory_space<vmem>>, %arg5: memref<64x1xf32, #tpu.memory_space<vmem>>, %arg6: memref<64x64xf32, #tpu.memory_space<vmem>>, %arg7: memref<64x1xf32, #tpu.memory_space<vmem>>, %arg8: memref<2x64xf32, #tpu.memory_space<vmem>>, %arg9: memref<2x1xf32, #tpu.memory_space<vmem>>, %arg10: memref<2x2xf32, #tpu.memory_space<vmem>>) attributes {dimension_semantics = [#tpu.dimension_semantics<parallel>], iteration_bounds = array<i64: 1>, scalar_prefetch = 0 : i64, scratch_operands = 0 : i64, tpu.core_type = #tpu.core_type<tc>, window_params = [{transform_indices = @transform_0, window_bounds = array<i64: 8, 2>}, {transform_indices = @transform_1, window_bounds = array<i64: 4, 2>}, {pipeline_mode = #tpu.pipeline_mode<synchronous>, transform_indices = @transform_2, window_bounds = array<i64: 64, 8>}, {pipeline_mode = #tpu.pipeline_mode<synchronous>, transform_indices = @transform_3, window_bounds = array<i64: 64, 4>}, {pipeline_mode = #tpu.pipeline_mode<synchronous>, transform_indices = @transform_4, window_bounds = array<i64: 64, 1>}, {pipeline_mode = #tpu.pipeline_mode<synchronous>, transform_indices = @transform_5, window_bounds = array<i64: 64, 64>}, {pipeline_mode = #tpu.pipeline_mode<synchronous>, transform_indices = @transform_6, window_bounds = array<i64: 64, 1>}, {pipeline_mode = #tpu.pipeline_mode<synchronous>, transform_indices = @transform_7, window_bounds = array<i64: 2, 64>}, {pipeline_mode = #tpu.pipeline_mode<synchronous>, transform_indices = @transform_8, window_bounds = array<i64: 2, 1>}, {transform_indices = @transform_9, window_bounds = array<i64: 2, 2>}]} {
    %c0 = arith.constant 0 : index
    %c0_0 = arith.constant 0 : index
    %0 = vector.load %arg3[%c0, %c0_0] : memref<64x8xf32, #tpu.memory_space<vmem>>, vector<64x8xf32>
    %c0_1 = arith.constant 0 : index
    %c0_2 = arith.constant 0 : index
    %1 = vector.load %arg1[%c0_1, %c0_2] : memref<8x2xf32, #tpu.memory_space<vmem>>, vector<8x2xf32>
    %cst = arith.constant dense<0.000000e+00> : vector<64x2xf32>
    %2 = tpu.matmul %0, %1, %cst {dimension_numbers = #tpu.dot_dimension_numbers<[1], [0], [0], [1], [0, 0, 1, 1], [], []>} : vector<64x8xf32>, vector<8x2xf32>, vector<64x2xf32> -> vector<64x2xf32>
    %c0_3 = arith.constant 0 : index
    %c0_4 = arith.constant 0 : index
    %3 = vector.load %arg4[%c0_3, %c0_4] : memref<64x4xf32, #tpu.memory_space<vmem>>, vector<64x4xf32>
    %c0_5 = arith.constant 0 : index
    %c0_6 = arith.constant 0 : index
    %4 = vector.load %arg2[%c0_5, %c0_6] : memref<4x2xf32, #tpu.memory_space<vmem>>, vector<4x2xf32>
    %cst_7 = arith.constant dense<0.000000e+00> : vector<64x2xf32>
    %5 = tpu.matmul %3, %4, %cst_7 {dimension_numbers = #tpu.dot_dimension_numbers<[1], [0], [0], [1], [0, 0, 1, 1], [], []>} : vector<64x4xf32>, vector<4x2xf32>, vector<64x2xf32> -> vector<64x2xf32>
    %6 = arith.addf %2, %5 : vector<64x2xf32>
    %c0_8 = arith.constant 0 : index
    %c0_9 = arith.constant 0 : index
    %7 = vector.load %arg5[%c0_8, %c0_9] : memref<64x1xf32, #tpu.memory_space<vmem>>, vector<64x1xf32>
    %8 = vector.broadcast %7 : vector<64x1xf32> to vector<64x2xf32>
    %9 = arith.addf %6, %8 : vector<64x2xf32>
    %cst_10 = arith.constant 0.000000e+00 : f32
    %10 = vector.broadcast %cst_10 : f32 to vector<64x2xf32>
    %11 = arith.maximumf %9, %10 : vector<64x2xf32>
    %c0_11 = arith.constant 0 : index
    %c0_12 = arith.constant 0 : index
    %12 = vector.load %arg6[%c0_11, %c0_12] : memref<64x64xf32, #tpu.memory_space<vmem>>, vector<64x64xf32>
    %cst_13 = arith.constant dense<0.000000e+00> : vector<64x2xf32>
    %13 = tpu.matmul %12, %11, %cst_13 {dimension_numbers = #tpu.dot_dimension_numbers<[1], [0], [0], [1], [0, 0, 1, 1], [], []>} : vector<64x64xf32>, vector<64x2xf32>, vector<64x2xf32> -> vector<64x2xf32>
    %c0_14 = arith.constant 0 : index
    %c0_15 = arith.constant 0 : index
    %14 = vector.load %arg7[%c0_14, %c0_15] : memref<64x1xf32, #tpu.memory_space<vmem>>, vector<64x1xf32>
    %15 = vector.broadcast %14 : vector<64x1xf32> to vector<64x2xf32>
    %16 = arith.addf %13, %15 : vector<64x2xf32>
    %cst_16 = arith.constant 0.000000e+00 : f32
    %17 = vector.broadcast %cst_16 : f32 to vector<64x2xf32>
    %18 = arith.maximumf %16, %17 : vector<64x2xf32>
    %c0_17 = arith.constant 0 : index
    %c0_18 = arith.constant 0 : index
    %19 = vector.load %arg8[%c0_17, %c0_18] : memref<2x64xf32, #tpu.memory_space<vmem>>, vector<2x64xf32>
    %cst_19 = arith.constant dense<0.000000e+00> : vector<2x2xf32>
    %20 = tpu.matmul %19, %18, %cst_19 {dimension_numbers = #tpu.dot_dimension_numbers<[1], [0], [0], [1], [0, 0, 1, 1], [], []>} : vector<2x64xf32>, vector<64x2xf32>, vector<2x2xf32> -> vector<2x2xf32>
    %c0_20 = arith.constant 0 : index
    %c0_21 = arith.constant 0 : index
    %21 = vector.load %arg9[%c0_20, %c0_21] : memref<2x1xf32, #tpu.memory_space<vmem>>, vector<2x1xf32>
    %22 = vector.broadcast %21 : vector<2x1xf32> to vector<2x2xf32>
    %23 = arith.addf %20, %22 : vector<2x2xf32>
    %c0_22 = arith.constant 0 : index
    %c0_23 = arith.constant 0 : index
    %24 = vector.load %arg10[%c0_22, %c0_23] : memref<2x2xf32, #tpu.memory_space<vmem>>, vector<2x2xf32>
    tpu.vector_store %arg10[%c0_22, %c0_23], %23 {strides = array<i32>} : memref<2x2xf32, #tpu.memory_space<vmem>>, vector<2x2xf32>,
    return
  }
  func.func @transform_0(%arg0: i32) -> (i32, i32) {
    %c0_i32 = arith.constant 0 : i32
    %c0_i32_0 = arith.constant 0 : i32
    return %c0_i32, %arg0 : i32, i32
  }
  func.func @transform_1(%arg0: i32) -> (i32, i32) {
    %c0_i32 = arith.constant 0 : i32
    %c0_i32_0 = arith.constant 0 : i32
    return %c0_i32, %arg0 : i32, i32
  }
  func.func @transform_2(%arg0: i32) -> (i32, i32) {
    %c0_i32 = arith.constant 0 : i32
    %c0_i32_0 = arith.constant 0 : i32
    %c0_i32_1 = arith.constant 0 : i32
    return %c0_i32, %c0_i32_0 : i32, i32
  }
  func.func @transform_3(%arg0: i32) -> (i32, i32) {
    %c0_i32 = arith.constant 0 : i32
    %c0_i32_0 = arith.constant 0 : i32
    %c0_i32_1 = arith.constant 0 : i32
    return %c0_i32, %c0_i32_0 : i32, i32
  }
  func.func @transform_4(%arg0: i32) -> (i32, i32) {
    %c0_i32 = arith.constant 0 : i32
    %c0_i32_0 = arith.constant 0 : i32
    %c0_i32_1 = arith.constant 0 : i32
    return %c0_i32, %c0_i32_0 : i32, i32
  }
  func.func @transform_5(%arg0: i32) -> (i32, i32) {
    %c0_i32 = arith.constant 0 : i32
    %c0_i32_0 = arith.constant 0 : i32
    %c0_i32_1 = arith.constant 0 : i32
    return %c0_i32, %c0_i32_0 : i32, i32
  }
  func.func @transform_6(%arg0: i32) -> (i32, i32) {
    %c0_i32 = arith.constant 0 : i32
    %c0_i32_0 = arith.constant 0 : i32
    %c0_i32_1 = arith.constant 0 : i32
    return %c0_i32, %c0_i32_0 : i32, i32
  }
  func.func @transform_7(%arg0: i32) -> (i32, i32) {
    %c0_i32 = arith.constant 0 : i32
    %c0_i32_0 = arith.constant 0 : i32
    %c0_i32_1 = arith.constant 0 : i32
    return %c0_i32, %c0_i32_0 : i32, i32
  }
  func.func @transform_8(%arg0: i32) -> (i32, i32) {
    %c0_i32 = arith.constant 0 : i32
    %c0_i32_0 = arith.constant 0 : i32
    %c0_i32_1 = arith.constant 0 : i32
    return %c0_i32, %c0_i32_0 : i32, i32
  }
  func.func @transform_9(%arg0: i32) -> (i32, i32) {
    %c0_i32 = arith.constant 0 : i32
    %c0_i32_0 = arith.constant 0 : i32
    return %c0_i32, %arg0 : i32, i32
  }
}

</mosaic_0001>

<bundles_post_ra>
// kernel: td3_critic_forward.1
= control target key start
LH: loop header
LB: loop body
LE: loop exit
PB: predicated region body
PF: predicated region fallthrough
CT: control target
= control target key end

     0   :  { %vm75_vm0 = vcmask 1043456   ;;  %vm50_vm1 = vcmask 31744   ;;  %v454_v0 = vmov 0   ;;  %vm120_vm2 = vcmask 64512   ;;  %s665_s4 = inlined_call_operand.vmem [shape: f32[64,1], index: 4, kind: input, shape index: {}]   ;;  %s666_s1 = inlined_call_operand.vmem [shape: f32[4,2], index: 1, kind: input, shape index: {}]   ;;  %s667_s0 = inlined_call_operand.vmem [shape: f32[8,2], index: 0, kind: input, shape index: {}]   ;;  %s668_s3 = inlined_call_operand.vmem [shape: f32[64,4], index: 3, kind: input, shape index: {}]   ;;  %s669_s2 = inlined_call_operand.vmem [shape: f32[64,8], index: 2, kind: input, shape index: {}]   ;;  %s670_s6 = inlined_call_operand.vmem [shape: f32[64,1], index: 6, kind: input, shape index: {}]   ;;  %s671_s8 = inlined_call_operand.vmem [shape: f32[2,1], index: 8, kind: input, shape index: {}]   ;;  %s672_s5 = inlined_call_operand.vmem [shape: f32[64,64], index: 5, kind: input, shape index: {}]   ;;  %s673_s7 = inlined_call_operand.vmem [shape: f32[2,64], index: 7, kind: input, shape index: {}]   ;;  %s674_s9 = inlined_call_operand.vmem [shape: f32[2,2], index: 9, kind: output, shape index: {}]  }
   0x1   :  { %452 = vset.pattern.permute.xlu1 %v454_v0  ;;  %v191_v1 = vld [vmem:[%s665_s4 + $0x28] sm:$0xff]  ;;  %v49_v2 = vld [vmem:[%s666_s1] sm:$0xf]  ;;  %451 = vset.pattern.permute.xlu0 %v454_v0  ;;  %v193_v6 = vld [vmem:[%s665_s4 + $0x38] sm:$0xff]  ;;  %vm306_vm3 = vcmask 523264   ;;  %vm410_vm4 = vcmask 9216  }
   0x2   :  { %v40_v3 = vld [vmem:[%s667_s0] sm:$0xff]  ;;  %221 = vperm.xlu1 %452, %v191_v1   ;;  %416 = vmatpush.msk.msra.mxu0 %vm75_vm0, %v49_v2  ;;  %v42_v8 = vld [vmem:[%s668_s3 + $0x8] sm:$0xff]  ;;  %v192_v10 = vld [vmem:[%s665_s4 + $0x30] sm:$0xff] }
   0x3   :  { %v41_v4 = vld [vmem:[%s668_s3] sm:$0xff]  ;;  %160 = vmatpush.msra.mxu1 %v40_v3  ;;  %231 = vperm.xlu0 %451, %v193_v6   ;;  %v33_v9 = vld [vmem:[%s669_s2 + $0x8] sm:$0xff]  ;;  %v189_v11 = vld [vmem:[%s665_s4 + $0x18] sm:$0xff] }
   0x4   :  { %v32_v5 = vld [vmem:[%s669_s2] sm:$0xff]  ;;  %417 = vmatmul.msk.f32.vlgmr.msra.gmra.mxu0 %vm50_vm1, %v41_v4  ;;  %453 = vset.pattern.permute.xlu2 %v454_v0  ;;  %v43_v13 = vld [vmem:[%s668_s3 + $0x10] sm:$0xff]  ;;  %v187_v15 = vld [vmem:[%s665_s4 + $0x8] sm:$0xff] }
   0x5   :  { %425 = vmatmul.msk.f32.vlgmr.msra.gmra.mxu1 %vm120_vm2, %v32_v5  ;;  %v190_v7 = vld [vmem:[%s665_s4 + $0x20] sm:$0xff]  ;;  %211 = vperm.xlu2 %453, %v189_v11   ;;  %v34_v14 = vld [vmem:[%s669_s2 + $0x10] sm:$0xff]  ;;  %v263_v17 = vld [vmem:[%s670_s6 + $0x28] sm:$0xff] }
   0x6   :  { %v186_v12 = vld [vmem:[%s665_s4] sm:$0xff]  ;;  %v188_v16 = vld [vmem:[%s665_s4 + $0x10] sm:$0xff]  ;;  %v44_v18 = vld [vmem:[%s668_s3 + $0x18] sm:$0xff] }
   0x7   :  { %v35_v19 = vld [vmem:[%s669_s2 + $0x18] sm:$0xff]  ;;  %v264_v20 = vld [vmem:[%s670_s6 + $0x30] sm:$0xff]  ;;  %v45_v23 = vld [vmem:[%s668_s3 + $0x20] sm:$0xff] }
   0x8   :  { %v265_v21 = vld [vmem:[%s670_s6 + $0x38] sm:$0xff]  ;;  %v260_v22 = vld [vmem:[%s670_s6 + $0x10] sm:$0xff]  ;;  %v36_v24 = vld [vmem:[%s669_s2 + $0x20] sm:$0xff] }
   0x9   :  { %v261_v25 = vld [vmem:[%s670_s6 + $0x18] sm:$0xff]  ;;  %v262_v26 = vld [vmem:[%s670_s6 + $0x20] sm:$0xff]  ;;  %v46_v28 = vld [vmem:[%s668_s3 + $0x28] sm:$0xff] }
   0xa   :  { %216 = vperm.xlu1 %452, %v190_v7   ;;  %v381_v27 = vld [vmem:[%s671_s8] sm:$0x3]  ;;  %v37_v29 = vld [vmem:[%s669_s2 + $0x28] sm:$0xff]  ;;  %v47_v32 = vld [vmem:[%s668_s3 + $0x30] sm:$0xff] }
   0xb   :  { %226 = vperm.xlu0 %451, %v192_v10   ;;  %v258_v30 = vld [vmem:[%s670_s6] sm:$0xff]  ;;  %v259_v31 = vld [vmem:[%s670_s6 + $0x8] sm:$0xff]  ;;  %v38_v33 = vld [vmem:[%s669_s2 + $0x30] sm:$0xff] }
   0xc   :  { %418 = vmatmul.msk.f32.gmra.mxu0 %vm50_vm1, %v42_v8  ;;  %v48_v34 = vld [vmem:[%s668_s3 + $0x38] sm:$0xff] }
   0xd   :  { %426 = vmatmul.msk.f32.gmra.mxu1 %vm120_vm2, %v33_v9  ;;  %206 = vperm.xlu2 %453, %v188_v16   ;;  %v39_v35 = vld [vmem:[%s669_s2 + $0x38] sm:$0xff] }
  0x12   :  { %196 = vperm.xlu1 %452, %v186_v12  }
  0x13   :  { %201 = vperm.xlu0 %451, %v187_v15  }
  0x14   :  { %419 = vmatmul.msk.f32.gmra.mxu0 %vm50_vm1, %v43_v13 }
  0x15   :  { %427 = vmatmul.msk.f32.gmra.mxu1 %vm120_vm2, %v34_v14  ;;  %303 = vperm.xlu2 %453, %v265_v21   ;;  %v256_v21 = vld [vmem:[%s672_s5 + $0x30] sm:$0xff] }
  0x1a   :  { %293 = vperm.xlu1 %452, %v263_v17  }
  0x1b   :  { %298 = vperm.xlu0 %451, %v264_v20   ;;  %v250_v20 = vld [vmem:[%s672_s5] sm:$0xff] }
  0x1c   :  { %420 = vmatmul.msk.f32.gmra.mxu0 %vm50_vm1, %v44_v18 }
  0x1d   :  { %428 = vmatmul.msk.f32.gmra.mxu1 %vm120_vm2, %v35_v19  ;;  %288 = vperm.xlu2 %453, %v262_v26   ;;  %v254_v26 = vld [vmem:[%s672_s5 + $0x20] sm:$0xff] }
  0x22   :  { %278 = vperm.xlu1 %452, %v260_v22   ;;  %v251_v22 = vld [vmem:[%s672_s5 + $0x8] sm:$0xff] }
  0x23   :  { %283 = vperm.xlu0 %451, %v261_v25   ;;  %v253_v25 = vld [vmem:[%s672_s5 + $0x18] sm:$0xff] }
  0x24   :  { %421 = vmatmul.msk.f32.gmra.mxu0 %vm50_vm1, %v45_v23  ;;  %v257_v23 = vld [vmem:[%s672_s5 + $0x38] sm:$0xff] }
  0x25   :  { %429 = vmatmul.msk.f32.gmra.mxu1 %vm120_vm2, %v36_v24  ;;  %273 = vperm.xlu2 %453, %v259_v31   ;;  %v252_v24 = vld [vmem:[%s672_s5 + $0x10] sm:$0xff] }
  0x2a   :  { %384 = vperm.xlu1 %452, %v381_v27   ;;  %v255_v27 = vld [vmem:[%s672_s5 + $0x28] sm:$0xff] }
  0x2b   :  { %268 = vperm.xlu0 %451, %v258_v30  }
  0x2c   :  { %422 = vmatmul.msk.f32.gmra.mxu0 %vm50_vm1, %v46_v28 }
  0x2d   :  { %430 = vmatmul.msk.f32.gmra.mxu1 %vm120_vm2, %v37_v29 }
  0x34   :  { %423 = vmatmul.msk.f32.gmra.mxu0 %vm50_vm1, %v47_v32 }
  0x35   :  { %431 = vmatmul.msk.f32.gmra.mxu1 %vm120_vm2, %v38_v33 }
  0x3c   :  { %424 = vmatmul.msk.f32.gmra.mxu0 %vm50_vm1, %v48_v34 }
  0x3d   :  { %432 = vmatmul.msk.f32.gmra.mxu1 %vm120_vm2, %v39_v35 }
  0x5f   :  { %v212_v53 = vpop.permute.xlu2 %211 }
  0x67   :  { %v207_v6 = vpop.permute.xlu2 %206 }
  0x6f   :  { %v304_v31 = vpop.permute.xlu2 %303 }
  0x74   :  { %v222_v51 = vpop.permute.xlu1 %221 }
  0x75   :  { %v232_v49 = vpop.permute.xlu0 %231 }
  0x7c   :  { %v217_v60 = vpop.permute.xlu1 %216 }
  0x7d   :  { %v227_v56 = vpop.permute.xlu0 %226 }
  0x81   :  { %v96_v36 = vpop.f32.mrf.mxu0 }
  0x82   :  { %v162_v37 = vpop.f32.mrf.mxu1 }
  0x83   :  { %v163_v38 = vadd.f32 %v162_v37, %v96_v36 }
  0x84   :  { %v197_v13 = vpop.permute.xlu1 %196 }
  0x85   :  { %v202_v10 = vpop.permute.xlu0 %201  ;;  %v234_v16 = vadd.f32 %v197_v13, %v163_v38 }
  0x87   :  { %v242_v19 = vmax.f32 %v234_v16, 0.0 }
  0x89   :  { %v99_v39 = vpop.f32.mrf.mxu0 }
  0x8a   :  { %v165_v40 = vpop.f32.mrf.mxu1 }
  0x8b   :  { %v166_v7 = vadd.f32 %v165_v40, %v99_v39 }
  0x8d   :  { %v235_v14 = vadd.f32 %v202_v10, %v166_v7  ;;  %v299_v30 = vpop.permute.xlu0 %298 }
  0x8f   :  { %v243_v18 = vmax.f32 %v235_v14, 0.0 }
  0x91   :  { %v102_v41 = vpop.f32.mrf.mxu0 }
  0x92   :  { %v168_v42 = vpop.f32.mrf.mxu1 }
  0x93   :  { %v169_v3 = vadd.f32 %v168_v42, %v102_v41  ;;  %v294_v41 = vpop.permute.xlu1 %293  ;;  %v289_v42 = vpop.permute.xlu2 %288 }
  0x95   :  { %v236_v11 = vadd.f32 %v207_v6, %v169_v3 }
  0x97   :  { %v244_v17 = vmax.f32 %v236_v11, 0.0 }
  0x99   :  { %v105_v43 = vpop.f32.mrf.mxu0 }
  0x9a   :  { %v171_v44 = vpop.f32.mrf.mxu1 }
  0x9b   :  { %v172_v0 = vadd.f32 %v171_v44, %v105_v43  ;;  %v284_v43 = vpop.permute.xlu0 %283 }
  0x9d   :  { %v237_v9 = vadd.f32 %v212_v53, %v172_v0 }
  0x9f   :  { %v245_v15 = vmax.f32 %v237_v9, 0.0 }
  0xa1   :  { %v108_v45 = vpop.f32.mrf.mxu0 }
  0xa2   :  { %v174_v46 = vpop.f32.mrf.mxu1 }
  0xa3   :  { %v175_v61 = vadd.f32 %v174_v46, %v108_v45 }
  0xa5   :  { %v238_v5 = vadd.f32 %v217_v60, %v175_v61  ;;  %v380_v60 = vld [vmem:[%s673_s7] sm:$0x3] }
  0xa7   :  { %v246_v12 = vmax.f32 %v238_v5, 0.0 }
  0xa9   :  { %v111_v47 = vpop.f32.mrf.mxu0 }
  0xaa   :  { %v177_v48 = vpop.f32.mrf.mxu1 }
  0xab   :  { %v178_v58 = vadd.f32 %v177_v48, %v111_v47 }
  0xad   :  { %v239_v2 = vadd.f32 %v222_v51, %v178_v58 }
  0xaf   :  { %v247_v8 = vmax.f32 %v239_v2, 0.0 }
  0xb1   :  { %v114_v50 = vpop.f32.mrf.mxu0 }
  0xb2   :  { %v180_v52 = vpop.f32.mrf.mxu1 }
  0xb3   :  { %v181_v54 = vadd.f32 %v180_v52, %v114_v50  ;;  %v274_v52 = vpop.permute.xlu2 %273 }
  0xb5   :  { %v240_v63 = vadd.f32 %v227_v56, %v181_v54 }
  0xb7   :  { %v248_v4 = vmax.f32 %v240_v63, 0.0 }
  0xb9   :  { %v117_v55 = vpop.f32.mrf.mxu0 }
  0xba   :  { %v183_v57 = vpop.f32.mrf.mxu1 }
  0xbb   :  { %v184_v59 = vadd.f32 %v183_v57, %v117_v55  ;;  %v269_v55 = vpop.permute.xlu0 %268 }
  0xbd   :  { %v241_v62 = vadd.f32 %v232_v49, %v184_v59  ;;  %v279_v49 = vpop.permute.xlu1 %278 }
  0xbf   :  { %v249_v1 = vmax.f32 %v241_v62, 0.0 }
  0xc1   :  { %339 = vmatpush.msra.mxu2 %v249_v1  ;;  %442 = vmatpush.msra.mxu3 %v249_v1 }
  0xc3   :  { %340 = vmatpush.msra.mxu2 %v248_v4  ;;  %443 = vmatpush.msra.mxu3 %v248_v4 }
  0xc5   :  { %341 = vmatpush.msra.mxu2 %v247_v8  ;;  %444 = vmatpush.msra.mxu3 %v247_v8  ;;  %v385_v61 = vpop.permute.xlu1 %384 }
  0xc7   :  { %342 = vmatpush.msra.mxu2 %v246_v12  ;;  %445 = vmatpush.msra.mxu3 %v246_v12 }
  0xc9   :  { %343 = vmatpush.msra.mxu2 %v245_v15  ;;  %446 = vmatpush.msra.mxu3 %v245_v15 }
  0xcb   :  { %344 = vmatpush.msra.mxu2 %v244_v17  ;;  %447 = vmatpush.msra.mxu3 %v244_v17 }
  0xcd   :  { %345 = vmatpush.msra.mxu2 %v243_v18  ;;  %448 = vmatpush.msra.mxu3 %v243_v18 }
  0xcf   :  { %346 = vmatpush.msra.mxu2 %v242_v19  ;;  %449 = vmatpush.msra.mxu3 %v242_v19 }
  0xd0   :  { %433 = vmatmul.msk.f32.vlgmr.msra.gmra.mxu2 %vm306_vm3, %v250_v20  ;;  %439 = vmatmul.msk.f32.vlgmr.msra.gmra.mxu3 %vm306_vm3, %v256_v21 }
  0xd8   :  { %434 = vmatmul.msk.f32.gmra.mxu2 %vm306_vm3, %v251_v22  ;;  %440 = vmatmul.msk.f32.gmra.mxu3 %vm306_vm3, %v257_v23 }
  0xe0   :  { %435 = vmatmul.msk.f32.gmra.mxu2 %vm306_vm3, %v252_v24 }
  0xe8   :  { %436 = vmatmul.msk.f32.gmra.mxu2 %vm306_vm3, %v253_v25 }
  0xf0   :  { %437 = vmatmul.msk.f32.gmra.mxu2 %vm306_vm3, %v254_v26 }
  0xf8   :  { %438 = vmatmul.msk.f32.gmra.mxu2 %vm306_vm3, %v255_v27 }
 0x153   :  { %v348_v28 = vpop.f32.mrf.mxu2  ;;  %v366_v29 = vpop.f32.mrf.mxu3 }
 0x154   :  { %v367_v34 = vadd.f32 %v366_v29, %v299_v30  ;;  %v349_v56 = vadd.f32 %v348_v28, %v269_v55 }
 0x156   :  { %v378_v37 = vmax.f32 %v367_v34, 0.0  ;;  %v372_v59 = vmax.f32 %v349_v56, 0.0 }
 0x15b   :  { %v351_v32 = vpop.f32.mrf.mxu2  ;;  %v369_v33 = vpop.f32.mrf.mxu3 }
 0x15c   :  { %v370_v35 = vadd.f32 %v369_v33, %v304_v31  ;;  %v352_v53 = vadd.f32 %v351_v32, %v274_v52 }
 0x15e   :  { %v379_v36 = vmax.f32 %v370_v35, 0.0  ;;  %v373_v58 = vmax.f32 %v352_v53, 0.0 }
 0x160   :  { %398 = vmatpush.msrb.mxu3 %v379_v36 }
 0x162   :  { %399 = vmatpush.msrb.mxu3 %v378_v37 }
 0x163   :  { %v354_v38 = vpop.f32.mrf.mxu2 }
 0x164   :  { %v355_v50 = vadd.f32 %v354_v38, %v279_v49 }
 0x166   :  { %v374_v57 = vmax.f32 %v355_v50, 0.0 }
 0x16b   :  { %v357_v39 = vpop.f32.mrf.mxu2 }
 0x16c   :  { %v358_v47 = vadd.f32 %v357_v39, %v284_v43 }
 0x16e   :  { %v375_v54 = vmax.f32 %v358_v47, 0.0 }
 0x173   :  { %v360_v40 = vpop.f32.mrf.mxu2 }
 0x174   :  { %v361_v45 = vadd.f32 %v360_v40, %v289_v42 }
 0x176   :  { %v376_v51 = vmax.f32 %v361_v45, 0.0 }
 0x17b   :  { %v363_v44 = vpop.f32.mrf.mxu2 }
 0x17c   :  { %v364_v46 = vadd.f32 %v363_v44, %v294_v41 }
 0x17e   :  { %v377_v48 = vmax.f32 %v364_v46, 0.0 }
 0x180   :  { %400 = vmatpush.msrb.mxu3 %v377_v48 }
 0x182   :  { %401 = vmatpush.msrb.mxu3 %v376_v51 }
 0x184   :  { %402 = vmatpush.msrb.mxu3 %v375_v54 }
 0x186   :  { %403 = vmatpush.msrb.mxu3 %v374_v57 }
 0x188   :  { %404 = vmatpush.msrb.mxu3 %v373_v58 }
 0x18a   :  { %405 = vmatpush.msrb.mxu3 %v372_v59 }
 0x18b   :  { %441 = vmatmul.msk.f32.vlgmr.msrb.gmra.mxu3 %vm306_vm3, %v380_v60 }
 0x20e   :  { %v407_v62 = vpop.f32.mrf.mxu3 }
 0x20f   :  { %v408_v63 = vadd.f32 %v407_v62, %v385_v61 }
 0x211   :  { %411 = vst.msk [vmem:[%s674_s9] sm:$0x3] %vm410_vm4, %v408_v63 }

</bundles_post_ra>
